<compile_context>
chip_gen: v7x
topology: tpu7x:2x2x1
jax: 0.10.0
libtpu: 0.0.40
codegen_flags: <defaults>
</compile_context>

<pallas_src>
import functools

import numpy as np
import jax
import jax.numpy as jnp
from jax import lax
from jax.experimental import pallas as pl
from jax.experimental.pallas import tpu as pltpu


def _round_up(v, m):
    return (v + m - 1) // m * m


_TAPS = tuple((dy, dx) for dy in (-1, 0, 1) for dx in (-1, 0, 1))


def depth_agg_kernel(x_ref, mask_ref, w1_ref, w2_ref, w3_ref, wo_ref, o_ref,
                     *, shifts):
    lanes = x_ref.shape[-1]
    mask = mask_ref[...]                               # (9*C_p+8, lanes) 0/1 f32
    ones_blk = jnp.ones((8, lanes), jnp.float32)       # bias row (+7 zeroed pad rows)

    def conv(a, w_ref):
        # im2col patch: 9 lane-rotated copies (XLU) + ones block, one mask multiply.
        blocks = []
        for d in shifts:
            if d == 0:
                blocks.append(a)
            else:
                blocks.append(pltpu.roll(a, shift=(-d) % lanes, axis=1))
        blocks.append(ones_blk)
        patch = jnp.concatenate(blocks, axis=0) * mask
        return jnp.dot(w_ref[...], patch, preferred_element_type=jnp.float32)

    x = x_ref[...]
    h = jnp.maximum(conv(x, w1_ref), 0.0)              # reduce_conv (+shift folded)
    t = jnp.maximum(conv(h, w2_ref), 0.0)              # conv block
    t = jnp.maximum(conv(t, w3_ref), 0.0)
    h = t + h                                          # residual
    o_ref[...] = conv(h, wo_ref).astype(o_ref.dtype)   # out_conv (+bias folded)


def depth_aggregation(x_nchw, params):
    """x_nchw: (N, Cin, H, W) float32. Returns (N, Cout, H, W) float32."""
    (w1, s1, b1, w2, s2, b2, w3, s3, b3, wo, bo) = params
    N, Cin, H, W = x_nchw.shape
    Mid = w1.shape[-1]
    Cout = wo.shape[-1]
    HW = H * W

    # Common padded channel count so one mask / one K width serves every conv.
    Cp = max(_round_up(Cin, 8), _round_up(Mid, 8))
    Cout_p = _round_up(Cout, 8)
    K = 9 * Cp + 8                                     # +8: ones/bias block

    # ---- one-time weight preparation (BN scale + shift/bias folded in) --------
    def prep_weight(w_hwio, scale, shift, cout_pad):
        w = w_hwio * scale                             # fold eval-mode BN scale
        ci, co = w.shape[2], w.shape[3]
        if ci < Cp:
            w = jnp.pad(w, ((0, 0), (0, 0), (0, Cp - ci), (0, 0)))
        wm = jnp.transpose(w, (3, 0, 1, 2)).reshape(co, 9 * Cp)   # (Co, 9*Cp)
        bias_blk = jnp.zeros((co, 8), jnp.float32).at[:, 0].set(shift)
        wm = jnp.concatenate([wm, bias_blk], axis=1)               # (Co, K)
        if co < cout_pad:
            wm = jnp.pad(wm, ((0, cout_pad - co), (0, 0)))
        return wm

    w1m = prep_weight(w1, s1[0], b1[0], Cp)
    w2m = prep_weight(w2, s2[0], b2[0], Cp)
    w3m = prep_weight(w3, s3[0], b3[0], Cp)
    wom = prep_weight(wo, jnp.ones((Cout,), jnp.float32), bo[0], Cout_p)

    # ---- activation slab: channels on sublanes, batch*spatial on lanes --------
    x = x_nchw
    if Cin < Cp:
        x = jnp.pad(x, ((0, 0), (0, Cp - Cin), (0, 0), (0, 0)))
    x = jnp.transpose(x.reshape(N, Cp, HW), (1, 0, 2)).reshape(Cp, N * HW)

    # How many whole images share one grid step (amortise per-step / per-dot
    # overhead, but keep >=2 parallel steps when N>=2 for v7x's two TCs).
    imgs = 1
    for g in range(1, N + 1):
        if N % g:
            continue
        lps = g * HW
        if lps > 2048:
            break
        if N >= 2 and N // g < 2:
            continue
        if lps % 128 and g != N:
            continue
        imgs = g
    lanes = imgs * HW
    steps = N // imgs

    # ---- precomputed per-step tap-validity mask (+ ones/bias block) -----------
    pos = np.arange(lanes) % HW
    row = pos // W
    col = pos % W
    mrows = []
    for dy, dx in _TAPS:
        valid = np.ones(lanes, np.bool_)
        if dy == -1:
            valid &= row >= 1
        elif dy == 1:
            valid &= row <= H - 2
        if dx == -1:
            valid &= col >= 1
        elif dx == 1:
            valid &= col <= W - 2
        mrows.append(np.broadcast_to(valid, (Cp, lanes)))
    ones_blk = np.concatenate(
        [np.ones((1, lanes), np.bool_), np.zeros((7, lanes), np.bool_)], axis=0)
    mask = jnp.asarray(np.concatenate(mrows + [ones_blk], axis=0), jnp.float32)

    shifts = tuple(dy * W + dx for dy, dx in _TAPS)
    kernel = functools.partial(depth_agg_kernel, shifts=shifts)

    full = lambda n: (0, 0)
    out = pl.pallas_call(
        kernel,
        out_shape=jax.ShapeDtypeStruct((Cout_p, N * HW), jnp.float32),
        grid_spec=pltpu.PrefetchScalarGridSpec(
            num_scalar_prefetch=0,
            grid=(steps,),
            in_specs=[
                pl.BlockSpec((Cp, lanes), lambda n: (0, n)),
                pl.BlockSpec((K, lanes), full),        # grid-invariant mask
                pl.BlockSpec((Cp, K), full),
                pl.BlockSpec((Cp, K), full),
                pl.BlockSpec((Cp, K), full),
                pl.BlockSpec((Cout_p, K), full),
            ],
            out_specs=pl.BlockSpec((Cout_p, lanes), lambda n: (0, n)),
        ),
        compiler_params=pltpu.CompilerParams(
            dimension_semantics=("parallel",),
        ),
    )(x, mask, w1m, w2m, w3m, wom)

    out = out.reshape(Cout_p, N, HW)
    out = jnp.transpose(out, (1, 0, 2))[:, :Cout]
    return out.reshape(N, Cout, H, W)


def make_params(key, in_channels, mid_channels, out_channels):
    """Deterministic synthetic parameters. Eval-mode BatchNorm expressed as
    per-channel scale/shift: scale = gamma/sqrt(var+eps), shift = beta - mean*scale."""
    ks = jax.random.split(key, 16)
    eps = 1e-5

    def conv_w(k, cin, cout):                          # HWIO
        return jax.random.normal(k, (3, 3, cin, cout), jnp.float32) * 0.1

    def bn_fold(kg, kb, km, kv, c):
        gamma = 1.0 + 0.1 * jax.random.normal(kg, (c,), jnp.float32)
        beta = 0.1 * jax.random.normal(kb, (c,), jnp.float32)
        mean = 0.1 * jax.random.normal(km, (c,), jnp.float32)
        var = 1.0 + 0.1 * jnp.abs(jax.random.normal(kv, (c,), jnp.float32))
        scale = gamma / jnp.sqrt(var + eps)
        shift = beta - mean * scale
        return scale.reshape(1, c), shift.reshape(1, c)

    w1 = conv_w(ks[0], in_channels, mid_channels)
    s1, b1 = bn_fold(ks[1], ks[2], ks[3], ks[4], mid_channels)
    w2 = conv_w(ks[5], mid_channels, mid_channels)
    s2, b2 = bn_fold(ks[6], ks[7], ks[8], ks[9], mid_channels)
    w3 = conv_w(ks[10], mid_channels, mid_channels)
    s3, b3 = bn_fold(ks[11], ks[12], ks[13], ks[14], mid_channels)
    wo = conv_w(ks[15], mid_channels, out_channels)
    bo = (0.05 * jnp.arange(out_channels, dtype=jnp.float32)).reshape(1, out_channels)
    return (w1, s1, b1, w2, s2, b2, w3, s3, b3, wo, bo)


def _reference(x_nchw, params):
    """Pure-JAX NHWC reference (lax conv) mirroring the PyTorch forward."""
    (w1, s1, b1, w2, s2, b2, w3, s3, b3, wo, bo) = params
    x = jnp.transpose(x_nchw, (0, 2, 3, 1))
    dn = ('NHWC', 'HWIO', 'NHWC')

    def conv(v, w):
        return lax.conv_general_dilated(v, w, (1, 1), 'SAME', dimension_numbers=dn)

    h = jnp.maximum(conv(x, w1) * s1[0] + b1[0], 0.0)
    t = jnp.maximum(conv(h, w2) * s2[0] + b2[0], 0.0)
    t = jnp.maximum(conv(t, w3) * s3[0] + b3[0], 0.0)
    h = t + h
    y = conv(h, wo) + bo[0]
    return jnp.transpose(y, (0, 3, 1, 2))


if __name__ == "__main__":
    key = jax.random.PRNGKey(0)
    k_x, k_p = jax.random.split(key)

    N, Cin, Mid, Cout, H, W = 2, 4, 8, 4, 16, 16
    x = jax.random.normal(k_x, (N, Cin, H, W), jnp.float32)
    params = make_params(k_p, Cin, Mid, Cout)

    y = depth_aggregation(x, params)
    y = jax.block_until_ready(y)

    y_ref = _reference(x, params)
    assert y.shape == (N, Cout, H, W)
    assert jnp.max(jnp.abs(y - y_ref)) < 2e-3, "mismatch vs JAX reference"

    print("KERNEL_OK")
</pallas_src>

<mosaic_0001>
module attributes {stable_mosaic.version = 11 : i64} {
  func.func @depth_agg_kernel(%arg0: i32, %arg1: memref<8x256xf32, #tpu.memory_space<vmem>>, %arg2: memref<80x256xf32, #tpu.memory_space<vmem>>, %arg3: memref<8x80xf32, #tpu.memory_space<vmem>>, %arg4: memref<8x80xf32, #tpu.memory_space<vmem>>, %arg5: memref<8x80xf32, #tpu.memory_space<vmem>>, %arg6: memref<8x80xf32, #tpu.memory_space<vmem>>, %arg7: memref<8x256xf32, #tpu.memory_space<vmem>>) attributes {dimension_semantics = [#tpu.dimension_semantics<parallel>], iteration_bounds = array<i64: 2>, scalar_prefetch = 0 : i64, scratch_operands = 0 : i64, tpu.core_type = #tpu.core_type<tc>, window_params = [{transform_indices = @transform_0, window_bounds = array<i64: 8, 256>}, {pipeline_mode = #tpu.pipeline_mode<synchronous>, transform_indices = @transform_1, window_bounds = array<i64: 80, 256>}, {pipeline_mode = #tpu.pipeline_mode<synchronous>, transform_indices = @transform_2, window_bounds = array<i64: 8, 80>}, {pipeline_mode = #tpu.pipeline_mode<synchronous>, transform_indices = @transform_3, window_bounds = array<i64: 8, 80>}, {pipeline_mode = #tpu.pipeline_mode<synchronous>, transform_indices = @transform_4, window_bounds = array<i64: 8, 80>}, {pipeline_mode = #tpu.pipeline_mode<synchronous>, transform_indices = @transform_5, window_bounds = array<i64: 8, 80>}, {transform_indices = @transform_6, window_bounds = array<i64: 8, 256>}]} {
    %c0 = arith.constant 0 : index
    %c0_0 = arith.constant 0 : index
    %0 = vector.load %arg2[%c0, %c0_0] : memref<80x256xf32, #tpu.memory_space<vmem>>, vector<80x256xf32>
    %cst = arith.constant 1.000000e+00 : f32
    %1 = vector.broadcast %cst : f32 to vector<8x256xf32>
    %c0_1 = arith.constant 0 : index
    %c0_2 = arith.constant 0 : index
    %2 = vector.load %arg1[%c0_1, %c0_2] : memref<8x256xf32, #tpu.memory_space<vmem>>, vector<8x256xf32>
    %c17_i32 = arith.constant 17 : i32
    %3 = tpu.dynamic_rotate %2 by %c17_i32 dim 1 : vector<8x256xf32>, i32 -> vector<8x256xf32>
    %c16_i32 = arith.constant 16 : i32
    %4 = tpu.dynamic_rotate %2 by %c16_i32 dim 1 : vector<8x256xf32>, i32 -> vector<8x256xf32>
    %c15_i32 = arith.constant 15 : i32
    %5 = tpu.dynamic_rotate %2 by %c15_i32 dim 1 : vector<8x256xf32>, i32 -> vector<8x256xf32>
    %c1_i32 = arith.constant 1 : i32
    %6 = tpu.dynamic_rotate %2 by %c1_i32 dim 1 : vector<8x256xf32>, i32 -> vector<8x256xf32>
    %c255_i32 = arith.constant 255 : i32
    %7 = tpu.dynamic_rotate %2 by %c255_i32 dim 1 : vector<8x256xf32>, i32 -> vector<8x256xf32>
    %c241_i32 = arith.constant 241 : i32
    %8 = tpu.dynamic_rotate %2 by %c241_i32 dim 1 : vector<8x256xf32>, i32 -> vector<8x256xf32>
    %c240_i32 = arith.constant 240 : i32
    %9 = tpu.dynamic_rotate %2 by %c240_i32 dim 1 : vector<8x256xf32>, i32 -> vector<8x256xf32>
    %c239_i32 = arith.constant 239 : i32
    %10 = tpu.dynamic_rotate %2 by %c239_i32 dim 1 : vector<8x256xf32>, i32 -> vector<8x256xf32>
    %11 = tpu.concatenate %3, %4, %5, %6, %2, %7, %8, %9, %10, %1 in 0 : vector<8x256xf32>, vector<8x256xf32>, vector<8x256xf32>, vector<8x256xf32>, vector<8x256xf32>, vector<8x256xf32>, vector<8x256xf32>, vector<8x256xf32>, vector<8x256xf32>, vector<8x256xf32> -> vector<80x256xf32>
    %12 = arith.mulf %11, %0 : vector<80x256xf32>
    %c0_3 = arith.constant 0 : index
    %c0_4 = arith.constant 0 : index
    %13 = vector.load %arg3[%c0_3, %c0_4] : memref<8x80xf32, #tpu.memory_space<vmem>>, vector<8x80xf32>
    %cst_5 = arith.constant dense<0.000000e+00> : vector<8x256xf32>
    %14 = tpu.matmul %13, %12, %cst_5 {dimension_numbers = #tpu.dot_dimension_numbers<[1], [0], [0], [1], [0, 0, 1, 1], [], []>} : vector<8x80xf32>, vector<80x256xf32>, vector<8x256xf32> -> vector<8x256xf32>
    %cst_6 = arith.constant 0.000000e+00 : f32
    %15 = vector.broadcast %cst_6 : f32 to vector<8x256xf32>
    %16 = arith.maximumf %14, %15 : vector<8x256xf32>
    %c17_i32_7 = arith.constant 17 : i32
    %17 = tpu.dynamic_rotate %16 by %c17_i32_7 dim 1 : vector<8x256xf32>, i32 -> vector<8x256xf32>
    %c16_i32_8 = arith.constant 16 : i32
    %18 = tpu.dynamic_rotate %16 by %c16_i32_8 dim 1 : vector<8x256xf32>, i32 -> vector<8x256xf32>
    %c15_i32_9 = arith.constant 15 : i32
    %19 = tpu.dynamic_rotate %16 by %c15_i32_9 dim 1 : vector<8x256xf32>, i32 -> vector<8x256xf32>
    %c1_i32_10 = arith.constant 1 : i32
    %20 = tpu.dynamic_rotate %16 by %c1_i32_10 dim 1 : vector<8x256xf32>, i32 -> vector<8x256xf32>
    %c255_i32_11 = arith.constant 255 : i32
    %21 = tpu.dynamic_rotate %16 by %c255_i32_11 dim 1 : vector<8x256xf32>, i32 -> vector<8x256xf32>
    %c241_i32_12 = arith.constant 241 : i32
    %22 = tpu.dynamic_rotate %16 by %c241_i32_12 dim 1 : vector<8x256xf32>, i32 -> vector<8x256xf32>
    %c240_i32_13 = arith.constant 240 : i32
    %23 = tpu.dynamic_rotate %16 by %c240_i32_13 dim 1 : vector<8x256xf32>, i32 -> vector<8x256xf32>
    %c239_i32_14 = arith.constant 239 : i32
    %24 = tpu.dynamic_rotate %16 by %c239_i32_14 dim 1 : vector<8x256xf32>, i32 -> vector<8x256xf32>
    %25 = tpu.concatenate %17, %18, %19, %20, %16, %21, %22, %23, %24, %1 in 0 : vector<8x256xf32>, vector<8x256xf32>, vector<8x256xf32>, vector<8x256xf32>, vector<8x256xf32>, vector<8x256xf32>, vector<8x256xf32>, vector<8x256xf32>, vector<8x256xf32>, vector<8x256xf32> -> vector<80x256xf32>
    %26 = arith.mulf %25, %0 : vector<80x256xf32>
    %c0_15 = arith.constant 0 : index
    %c0_16 = arith.constant 0 : index
    %27 = vector.load %arg4[%c0_15, %c0_16] : memref<8x80xf32, #tpu.memory_space<vmem>>, vector<8x80xf32>
    %cst_17 = arith.constant dense<0.000000e+00> : vector<8x256xf32>
    %28 = tpu.matmul %27, %26, %cst_17 {dimension_numbers = #tpu.dot_dimension_numbers<[1], [0], [0], [1], [0, 0, 1, 1], [], []>} : vector<8x80xf32>, vector<80x256xf32>, vector<8x256xf32> -> vector<8x256xf32>
    %cst_18 = arith.constant 0.000000e+00 : f32
    %29 = vector.broadcast %cst_18 : f32 to vector<8x256xf32>
    %30 = arith.maximumf %28, %29 : vector<8x256xf32>
    %c17_i32_19 = arith.constant 17 : i32
    %31 = tpu.dynamic_rotate %30 by %c17_i32_19 dim 1 : vector<8x256xf32>, i32 -> vector<8x256xf32>
    %c16_i32_20 = arith.constant 16 : i32
    %32 = tpu.dynamic_rotate %30 by %c16_i32_20 dim 1 : vector<8x256xf32>, i32 -> vector<8x256xf32>
    %c15_i32_21 = arith.constant 15 : i32
    %33 = tpu.dynamic_rotate %30 by %c15_i32_21 dim 1 : vector<8x256xf32>, i32 -> vector<8x256xf32>
    %c1_i32_22 = arith.constant 1 : i32
    %34 = tpu.dynamic_rotate %30 by %c1_i32_22 dim 1 : vector<8x256xf32>, i32 -> vector<8x256xf32>
    %c255_i32_23 = arith.constant 255 : i32
    %35 = tpu.dynamic_rotate %30 by %c255_i32_23 dim 1 : vector<8x256xf32>, i32 -> vector<8x256xf32>
    %c241_i32_24 = arith.constant 241 : i32
    %36 = tpu.dynamic_rotate %30 by %c241_i32_24 dim 1 : vector<8x256xf32>, i32 -> vector<8x256xf32>
    %c240_i32_25 = arith.constant 240 : i32
    %37 = tpu.dynamic_rotate %30 by %c240_i32_25 dim 1 : vector<8x256xf32>, i32 -> vector<8x256xf32>
    %c239_i32_26 = arith.constant 239 : i32
    %38 = tpu.dynamic_rotate %30 by %c239_i32_26 dim 1 : vector<8x256xf32>, i32 -> vector<8x256xf32>
    %39 = tpu.concatenate %31, %32, %33, %34, %30, %35, %36, %37, %38, %1 in 0 : vector<8x256xf32>, vector<8x256xf32>, vector<8x256xf32>, vector<8x256xf32>, vector<8x256xf32>, vector<8x256xf32>, vector<8x256xf32>, vector<8x256xf32>, vector<8x256xf32>, vector<8x256xf32> -> vector<80x256xf32>
    %40 = arith.mulf %39, %0 : vector<80x256xf32>
    %c0_27 = arith.constant 0 : index
    %c0_28 = arith.constant 0 : index
    %41 = vector.load %arg5[%c0_27, %c0_28] : memref<8x80xf32, #tpu.memory_space<vmem>>, vector<8x80xf32>
    %cst_29 = arith.constant dense<0.000000e+00> : vector<8x256xf32>
    %42 = tpu.matmul %41, %40, %cst_29 {dimension_numbers = #tpu.dot_dimension_numbers<[1], [0], [0], [1], [0, 0, 1, 1], [], []>} : vector<8x80xf32>, vector<80x256xf32>, vector<8x256xf32> -> vector<8x256xf32>
    %cst_30 = arith.constant 0.000000e+00 : f32
    %43 = vector.broadcast %cst_30 : f32 to vector<8x256xf32>
    %44 = arith.maximumf %42, %43 : vector<8x256xf32>
    %45 = arith.addf %44, %16 : vector<8x256xf32>
    %c17_i32_31 = arith.constant 17 : i32
    %46 = tpu.dynamic_rotate %45 by %c17_i32_31 dim 1 : vector<8x256xf32>, i32 -> vector<8x256xf32>
    %c16_i32_32 = arith.constant 16 : i32
    %47 = tpu.dynamic_rotate %45 by %c16_i32_32 dim 1 : vector<8x256xf32>, i32 -> vector<8x256xf32>
    %c15_i32_33 = arith.constant 15 : i32
    %48 = tpu.dynamic_rotate %45 by %c15_i32_33 dim 1 : vector<8x256xf32>, i32 -> vector<8x256xf32>
    %c1_i32_34 = arith.constant 1 : i32
    %49 = tpu.dynamic_rotate %45 by %c1_i32_34 dim 1 : vector<8x256xf32>, i32 -> vector<8x256xf32>
    %c255_i32_35 = arith.constant 255 : i32
    %50 = tpu.dynamic_rotate %45 by %c255_i32_35 dim 1 : vector<8x256xf32>, i32 -> vector<8x256xf32>
    %c241_i32_36 = arith.constant 241 : i32
    %51 = tpu.dynamic_rotate %45 by %c241_i32_36 dim 1 : vector<8x256xf32>, i32 -> vector<8x256xf32>
    %c240_i32_37 = arith.constant 240 : i32
    %52 = tpu.dynamic_rotate %45 by %c240_i32_37 dim 1 : vector<8x256xf32>, i32 -> vector<8x256xf32>
    %c239_i32_38 = arith.constant 239 : i32
    %53 = tpu.dynamic_rotate %45 by %c239_i32_38 dim 1 : vector<8x256xf32>, i32 -> vector<8x256xf32>
    %54 = tpu.concatenate %46, %47, %48, %49, %45, %50, %51, %52, %53, %1 in 0 : vector<8x256xf32>, vector<8x256xf32>, vector<8x256xf32>, vector<8x256xf32>, vector<8x256xf32>, vector<8x256xf32>, vector<8x256xf32>, vector<8x256xf32>, vector<8x256xf32>, vector<8x256xf32> -> vector<80x256xf32>
    %55 = arith.mulf %54, %0 : vector<80x256xf32>
    %c0_39 = arith.constant 0 : index
    %c0_40 = arith.constant 0 : index
    %56 = vector.load %arg6[%c0_39, %c0_40] : memref<8x80xf32, #tpu.memory_space<vmem>>, vector<8x80xf32>
    %cst_41 = arith.constant dense<0.000000e+00> : vector<8x256xf32>
    %57 = tpu.matmul %56, %55, %cst_41 {dimension_numbers = #tpu.dot_dimension_numbers<[1], [0], [0], [1], [0, 0, 1, 1], [], []>} : vector<8x80xf32>, vector<80x256xf32>, vector<8x256xf32> -> vector<8x256xf32>
    %c0_42 = arith.constant 0 : index
    %c0_43 = arith.constant 0 : index
    %58 = vector.load %arg7[%c0_42, %c0_43] : memref<8x256xf32, #tpu.memory_space<vmem>>, vector<8x256xf32>
    tpu.vector_store %arg7[%c0_42, %c0_43], %57 {strides = array<i32>} : memref<8x256xf32, #tpu.memory_space<vmem>>, vector<8x256xf32>,
    return
  }
  func.func @transform_0(%arg0: i32) -> (i32, i32) {
    %c0_i32 = arith.constant 0 : i32
    %c0_i32_0 = arith.constant 0 : i32
    return %c0_i32, %arg0 : i32, i32
  }
  func.func @transform_1(%arg0: i32) -> (i32, i32) {
    %c0_i32 = arith.constant 0 : i32
    %c0_i32_0 = arith.constant 0 : i32
    %c0_i32_1 = arith.constant 0 : i32
    return %c0_i32, %c0_i32_0 : i32, i32
  }
  func.func @transform_2(%arg0: i32) -> (i32, i32) {
    %c0_i32 = arith.constant 0 : i32
    %c0_i32_0 = arith.constant 0 : i32
    %c0_i32_1 = arith.constant 0 : i32
    return %c0_i32, %c0_i32_0 : i32, i32
  }
  func.func @transform_3(%arg0: i32) -> (i32, i32) {
    %c0_i32 = arith.constant 0 : i32
    %c0_i32_0 = arith.constant 0 : i32
    %c0_i32_1 = arith.constant 0 : i32
    return %c0_i32, %c0_i32_0 : i32, i32
  }
  func.func @transform_4(%arg0: i32) -> (i32, i32) {
    %c0_i32 = arith.constant 0 : i32
    %c0_i32_0 = arith.constant 0 : i32
    %c0_i32_1 = arith.constant 0 : i32
    return %c0_i32, %c0_i32_0 : i32, i32
  }
  func.func @transform_5(%arg0: i32) -> (i32, i32) {
    %c0_i32 = arith.constant 0 : i32
    %c0_i32_0 = arith.constant 0 : i32
    %c0_i32_1 = arith.constant 0 : i32
    return %c0_i32, %c0_i32_0 : i32, i32
  }
  func.func @transform_6(%arg0: i32) -> (i32, i32) {
    %c0_i32 = arith.constant 0 : i32
    %c0_i32_0 = arith.constant 0 : i32
    return %c0_i32, %arg0 : i32, i32
  }
}

</mosaic_0001>

<bundles_post_ra>
// kernel: tpu_custom_call.1
= control target key start
LH: loop header
LB: loop body
LE: loop exit
PB: predicated region body
PF: predicated region fallthrough
CT: control target
= control target key end

     0   :  { %11 = vsyncpa [#allocation3], 0  ;;  %s2106_s0 = inlined_call_operand.hbm [shape: f32[8,512], index: 0, kind: input, shape index: {}]   ;;  %s2107_s1 = inlined_call_operand.hbm [shape: f32[80,256], index: 1, kind: input, shape index: {}]   ;;  %s2108_s2 = inlined_call_operand.hbm [shape: f32[8,80], index: 2, kind: input, shape index: {}]   ;;  %s2109_s3 = inlined_call_operand.vmem [shape: f32[8,80], index: 3, kind: input, shape index: {}]   ;;  %s2110_s4 = inlined_call_operand.hbm [shape: f32[8,80], index: 4, kind: input, shape index: {}]   ;;  %s2111_s5 = inlined_call_operand.vmem [shape: f32[8,80], index: 5, kind: input, shape index: {}]   ;;  %s2112_s6 = inlined_call_operand.hbm [shape: f32[8,512], index: 6, kind: output, shape index: {}]  }
   0x1   :  { %13 = vsyncpa [#allocation3 + $0x1], 0 }
   0x2   :  { %14 = vsyncpa [#allocation6], 0 }
   0x3   :  { %15 = vsyncpa [#allocation9], 0 }
   0x4   :  { %16 = vsyncpa [#allocation4], 0 }
   0x5   :  { %18 = vsyncpa [#allocation4 + $0x1], 0  ;;  %s1466_s21 = smov 0   ;;  %s1468_s22 = smov 0  }
   0x6   :  { %s1470_s23 = smov 0   ;;  %s1472_s24 = smov 0  }
   0x7 LB: > { %s1487_s25 = sadd.s32 4294967295, %s1413_s24   ;;  %s1031_s26 = sadd.s32 4294967294, %s1413_s24   ;;  %s1413_s24 = sphi %s1472_s24, %s2135_s24   ;;  %s1409_s23 = sphi %s1470_s23, %s2134_s23   ;;  %s1405_s22 = sphi %s1468_s22, %s2133_s22   ;;  %s1401_s21 = sphi %s1466_s21, %s2132_s21  }
   0x8   : > { %p44_p0 = scmp.ne.s32.totalorder %s1405_s22, %s1401_s21  ;;  %p2113_p1 = scmp.eq.s32.totalorder %s1487_s25, 0 }
   0x9   : > { %p179_p3 = scmp.eq.s32.totalorder %s1031_s26, 1  ;;  %p1032_p5 = scmp.ge.s32.totalorder %s1413_s24, 1 }
   0xa   : > { %p1496_p4 = por %p2113_p1, %p44_p0  ;;  %p186_p7 = scmp.lt.s32.totalorder %s1413_s24, 3 }
   0xb   : > { %p1501_p6 = por %p179_p3, %p44_p0  ;;  %s1415_s30 = smov [#allocation5]  }
   0xc   : > { %s2116_s27 = scalar_select %p1496_p4, 1, 0 }
   0xd   : > { %s2117_s28 = scalar_select %p1501_p6, 1, 0 }
   0xe   : > { %p1506_p8 = pnand %p1032_p5, %p186_p7  ;;  %s198_s7 = sshll.u32 %s1415_s30, 4  ;;  %s1510_s7 = int_to_ptr.vmem [resolvable:$true] %s198_s7 }
   0xf   : > { %s1416_s9 = smov [#allocation7]   ;;  %s1417_s11 = smov [#allocation8]  }
  0x10   : > { %s2118_s29 = scalar_select %p1506_p8, 1, 0 }
  0x11   : > { %p1153_p9 = pneg %p1506_p8  ;;  %s212_s10 = sshll.u32 %s1416_s9, 4  ;;  %s1521_s10 = int_to_ptr.vmem [resolvable:$true] %s212_s10 }
  0x12   : > { %s1523_s12 = sshll.u32 %s1417_s11, 4  ;;  %s1225_s15 = scalar_lea.hbm %s2107_s1, 2560  ;;  %s227_s12 = int_to_ptr.vmem [resolvable:$true] %s1523_s12 }
  0x13   : > { %p1517_p11 = pnand %p1153_p9, %p2113_p1  ;;  %p1226_p12 = scmp.ne.s32.totalorder %s2107_s1, %s1225_s15 }
  0x14   : > { %p1232_p5 = scmp.lt.u32.totalorder %s1225_s15, %s2107_s1 }
  0x15   : > { %p1533_p13 = pneg %p1517_p11 }
  0x17   : > { %p1228_p0 = pnand %p1533_p13, %p1226_p12 }
  0x19   : > { %p1229_p3 = pneg %p1228_p0 }
  0x1b   : > { %p1234_p7 = pnand %p1232_p5, %p1229_p3 }
  0x1d   : > { %1237 = shalt.err (!%p1234_p7)
}
  0x1e   : > { %s1238_s26 = scalar_lea.vmem %s1510_s7, 2560  ;;  %p1246_p2 = scmp.lt.s32.totalorder %s1510_s7, %s1510_s7 }
  0x1f   : > { %p1239_p9 = scmp.ne.s32.totalorder %s1510_s7, %s1238_s26  ;;  %p1247_p6 = scmp.lt.s32.totalorder %s1238_s26, %s1238_s26 }
  0x21   : > { %p1241_p10 = pnand %p1239_p9, %p1533_p13  ;;  %p1248_p12 = por %p1247_p6, %p1246_p2 }
  0x23   : > { %p1242_p1 = pneg %p1241_p10 }
  0x25   : > { %p1249_p0 = pnand %p1248_p12, %p1242_p1 }
  0x27   : > { %1252 = shalt.err (!%p1249_p0)
}
  0x28   : > { %s1418_s30 = smov 256   ;;  %s1419_s9 = smov 16  }
  0x29   : > { %1156 = dma.hbm_to_vmem [thread:$0]  (!%p1517_p11), %s2107_s1, 2560, %s1510_s7, [#allocation6], %s1418_s30, %s1418_s30, %s1419_s9  }
  0x2a   : > { %s1253_s16 = scalar_lea.hbm %s2108_s2, 128 }
  0x2b   : > { %p1254_p2 = scmp.ne.s32.totalorder %s2108_s2, %s1253_s16  ;;  %p1260_p10 = scmp.lt.u32.totalorder %s1253_s16, %s2108_s2 }
  0x2d   : > { %p1256_p1 = pnand %p1254_p2, %p1533_p13 }
  0x2f   : > { %p1257_p6 = pneg %p1256_p1 }
  0x31   : > { %p1262_p3 = pnand %p1260_p10, %p1257_p6 }
  0x33   : > { %1265 = shalt.err (!%p1262_p3)
}
  0x34   : > { %s1266_s7 = scalar_lea.vmem %s1521_s10, 128  ;;  %p1274_p12 = scmp.lt.s32.totalorder %s1521_s10, %s1521_s10 }
  0x35   : > { %p1267_p5 = scmp.ne.s32.totalorder %s1521_s10, %s1266_s7  ;;  %p1275_p0 = scmp.lt.s32.totalorder %s1266_s7, %s1266_s7 }
  0x37   : > { %p1269_p7 = pnand %p1267_p5, %p1533_p13  ;;  %p1276_p2 = por %p1275_p0, %p1274_p12 }
  0x39   : > { %p1270_p9 = pneg %p1269_p7 }
  0x3b   : > { %p1277_p1 = pnand %p1276_p2, %p1270_p9 }
  0x3d   : > { %1280 = shalt.err (!%p1277_p1)
}
  0x3e   : > { %1159 = dma.hbm_to_vmem [thread:$0]  (!%p1517_p11), %s2108_s2, 128, %s1521_s10, [#allocation6]  }
  0x3f   : > { %s1281_s14 = scalar_lea.hbm %s2110_s4, 128 }
  0x40   : > { %p1282_p6 = scmp.ne.s32.totalorder %s2110_s4, %s1281_s14  ;;  %p1288_p5 = scmp.lt.u32.totalorder %s1281_s14, %s2110_s4 }
  0x42   : > { %p1284_p10 = pnand %p1282_p6, %p1533_p13 }
  0x44   : > { %p1285_p3 = pneg %p1284_p10 }
  0x46   : > { %p1290_p7 = pnand %p1288_p5, %p1285_p3 }
  0x48   : > { %1293 = shalt.err (!%p1290_p7)
}
  0x49   : > { %s1294_s20 = scalar_lea.vmem %s227_s12, 128  ;;  %p1302_p2 = scmp.lt.s32.totalorder %s227_s12, %s227_s12 }
  0x4a   : > { %p1295_p9 = scmp.ne.s32.totalorder %s227_s12, %s1294_s20  ;;  %p1303_p1 = scmp.lt.s32.totalorder %s1294_s20, %s1294_s20 }
  0x4c   : > { %p1297_p12 = pnand %p1295_p9, %p1533_p13  ;;  %p1304_p4 = por %p1303_p1, %p1302_p2 }
  0x4e   : > { %p1298_p0 = pneg %p1297_p12 }
  0x50   : > { %p1305_p8 = pnand %p1304_p4, %p1298_p0 }
  0x52   : > { %1308 = shalt.err (!%p1305_p8)
}
  0x53   : > { %1162 = dma.hbm_to_vmem [thread:$0]  (!%p1517_p11), %s2110_s4, 128, %s227_s12, [#allocation9]  }
  0x54   : > { %s1597_s18 = sadd.s32 1, %s1413_s24   ;;  %s31_s8 = sadd.s32 1, %s1409_s23 }
  0x55   : > { %s28_s7 = ssub.s32 %s1413_s24, %s1597_s18  ;;  %p38_p8 = scmp.ne.s32.totalorder %s1409_s23, %s1405_s22 }
  0x56   : > { %p29_p4 = scmp.eq.s32.totalorder %s28_s7, 0  ;;  %p39_p13 = scmp.eq.s32.totalorder %s1413_s24, 0 }
  0x57   : > { %p1174_p6 = scmp.lt.s32.totalorder %s1413_s24, 2  ;;  %p2121_p3 = scmp.eq.s32.totalorder %s1487_s25, 1 }
  0x58   : > { %s1607_s30 = scalar_select %p29_p4, %s1409_s23, %s31_s8  }
  0x59   : > { %p40_p10 = por %p39_p13, %p38_p8  ;;  %p1611_p5 = por %p2121_p3, %p38_p8 }
  0x5a   : > { %s240_s11 = sand.u32 1, %s1409_s23   ;;  %s1055_s13 = sshll.u32 %s1413_s24, 8 }
  0x5b   : > { %s1037_s12 = sshll.u32 %s240_s11, 4  ;;  %s1620_s16 = scalar_lea.hbm %s2106_s0, %s1055_s13 }
  0x5c   : > { %s244_s17 = scalar_lea.vmem [#allocation2], %s1037_s12  ;;  %p1622_p11 = pnand %p1174_p6, %p40_p10 }
  0x5d   : > { %s252_s19 = sshll.u32 %s244_s17, 4  ;;  %s241_s10 = scalar_lea.sflag [#allocation3], %s240_s11  ;;  %s1626_s19 = int_to_ptr.vmem [resolvable:$true] %s252_s19 }
  0x5e   : > { %s1309_s26 = scalar_lea.hbm %s1620_s16, 256  ;;  %p1311_p9 = pneg %p1622_p11 }
  0x5f   : > { %p1310_p7 = scmp.ne.s32.totalorder %s1620_s16, %s1309_s26  ;;  %s1314_s13 = scalar_lea.hbm %s2106_s0, 512 }
  0x60   : > { %p1315_p2 = scmp.lt.u32.totalorder %s1620_s16, %s2106_s0  ;;  %p1316_p1 = scmp.lt.u32.totalorder %s1314_s13, %s1309_s26 }
  0x61   : > { %p1312_p12 = pnand %p1311_p9, %p1310_p7  ;;  %p1318_p8 = scmp.lt.u32.totalorder %s1309_s26, %s1620_s16 }
  0x62   : > { %p1317_p4 = por %p1316_p1, %p1315_p2 }
  0x63   : > { %p1313_p0 = pneg %p1312_p12 }
  0x64   : > { %p1319_p13 = por %p1318_p8, %p1317_p4 }
  0x66   : > { %p1320_p6 = pnand %p1319_p13, %p1313_p0 }
  0x68   : > { %1323 = shalt.err (!%p1320_p6)
}
  0x69   : > { %s1324_s11 = scalar_lea.vmem %s1626_s19, 256  ;;  %s1420_s15 = smov [#allocation2]  }
  0x6a   : > { %p1325_p10 = scmp.ne.s32.totalorder %s1626_s19, %s1324_s11  ;;  %s1329_s17 = sshll.u32 %s1420_s15, 4  ;;  %s1330_s17 = int_to_ptr.vmem [resolvable:$false] %s1329_s17 }
  0x6b   : > { %s1331_s7 = scalar_lea.vmem %s1330_s17, 512  ;;  %p1332_p12 = scmp.lt.s32.totalorder %s1626_s19, %s1330_s17 }
  0x6c   : > { %p1327_p3 = pnand %p1325_p10, %p1311_p9  ;;  %p1333_p2 = scmp.lt.s32.totalorder %s1331_s7, %s1324_s11 }
  0x6e   : > { %p1328_p7 = pneg %p1327_p3  ;;  %p1334_p1 = por %p1333_p2, %p1332_p12 }
  0x70   : > { %p1335_p4 = pnand %p1334_p1, %p1328_p7 }
  0x72   : > { %1338 = shalt.err (!%p1335_p4)
}
  0x73   : > { %1166 = dma.hbm_to_vmem [thread:$0]  (!%p1622_p11), %s1620_s16, 256, %s1626_s19, %s241_s10  }
  0x74   : > { %p2124_p0 = scmp.ne.s32.totalorder %s2118_s29, 0 }
  0x75   : > { %s1656_s26 = sand.u32 (!%p2124_p0), 1, %s1405_s22   ;;  %p2125_p9 = scmp.ne.s32.totalorder (!%p2124_p0), %s2116_s27, 0 }
  0x76   : > { %261 = sbr.rel (%p2124_p0) target bundleno = 1616 (0x650), region = 44  ;;  %s1041_s8 = sshll.u32 (!%p2124_p0), %s1656_s26, 4 }
  0x77   : > { %s264_s13 = scalar_lea.sflag (!%p2124_p0), [#allocation3], %s1656_s26  ;;  %s267_s12 = scalar_lea.vmem (!%p2124_p0), [#allocation2], %s1041_s8 }
  0x7d   : > { %1384 = dma.done.wait (%p2125_p9), %s264_s13, 256  }
  0x7e   : > { %1386 = vsyncadd (%p2125_p9), %s264_s13, 4294967040  ;;  %p2126_p11 = scmp.eq.s32.totalorder %s1487_s25, 0 }
  0x80   : > { %1388 = dma.done.wait (%p2126_p11), [#allocation6], 2688   ;;  %p2127_p8 = pmov %p2126_p11 }
  0x82   : > { %1390 = vsyncadd (%p2127_p8), [#allocation6], 4294964608  ;;  %p2128_p13 = pmov %p2127_p8 }
  0x83   : > { %p2129_p6 = pmov %p2127_p8 }
  0x84   : > { %1392 = dma.done.wait (%p2128_p13), [#allocation9], 128  }
  0x85   : > { %1394 = vsyncadd (%p2129_p6), [#allocation9], 4294967168  ;;  %v1674_v0 = vld [vmem:[%s267_s12] sm:$0xff]  ;;  %s1421_s29 = smov 16   ;;  %s1422_s27 = smov 17   ;;  %v1680_v1 = vld [vmem:[%s267_s12 + $0x8] sm:$0xff]  ;;  %v336_v3 = vlaneseq }
  0x86   : > { %341 = vrot.lane.b32.xlu1 %v1674_v0, %s1421_s29  ;;  %332 = vrot.lane.b32.xlu0 %v1674_v0, %s1422_s27  ;;  %s1423_s16 = smov 15   ;;  %s1424_s19 = smov 1   ;;  %v1427_v2 = vmov 0.0   ;;  %v1715_v7 = vld [vmem:[#allocation5 + $0x10] sm:$0xff]  ;;  %v1718_v8 = vld [vmem:[#allocation5] sm:$0xff]  ;;  %v1720_v9 = vld [vmem:[#allocation5 + $0x8] sm:$0xff] }
  0x87   : > { %s1425_s20 = smov 127   ;;  %s1426_s10 = smov 113   ;;  %477 = vmatprep.mubr.f32.mxu0 %v1427_v2  ;;  %620 = vmatprep.mubr.f32.mxu1 %v1427_v2  ;;  %v1712_v4 = vand.u32 127, %v336_v3  ;;  %v1722_v10 = vld [vmem:[#allocation5 + $0x18] sm:$0xff]  ;;  %v1737_v25 = vld [vmem:[#allocation5 + $0x20] sm:$0xff]  ;;  %v1740_v26 = vld [vmem:[#allocation5 + $0x28] sm:$0xff] }
  0x88   : > { %s1428_s14 = smov 112   ;;  %s1429_s11 = smov 111   ;;  %v1746_v29 = vld [vmem:[#allocation5 + $0x30] sm:$0xff]  ;;  %v1748_v30 = vld [vmem:[#allocation5 + $0x38] sm:$0xff]  ;;  %v1755_v35 = vld [vmem:[#allocation5 + $0x48] sm:$0xff]  ;;  %vm409_vm8 = vcmask 654336  }
  0x89   : > { %vm345_vm0 = vcmp.lt.s32.totalorder %v1712_v4, 16  ;;  %vm338_vm1 = vcmp.lt.s32.totalorder %v1712_v4, 17  ;;  %vm352_vm2 = vcmp.lt.s32.totalorder %v1712_v4, 15  ;;  %vm359_vm3 = vcmp.lt.s32.totalorder %v1712_v4, 1  ;;  %v1757_v36 = vld [vmem:[#allocation5 + $0x40] sm:$0xff]  ;;  %v1763_v41 = vld [vmem:[#allocation5 + $0x50] sm:$0xff] }
  0x8a   : > { %343 = vrot.lane.b32.xlu1 %v1680_v1, %s1421_s29  ;;  %334 = vrot.lane.b32.xlu0 %v1680_v1, %s1422_s27  ;;  %vm366_vm4 = vcmp.lt.s32.totalorder %v1712_v4, 127  ;;  %v1765_v42 = vld [vmem:[#allocation5 + $0x58] sm:$0xff]  ;;  %v399_v47 = vmul.f32 %v1680_v1, %v1755_v35  ;;  %v398_v48 = vmul.f32 %v1674_v0, %v1757_v36  ;;  %vm373_vm5 = vcmp.lt.s32.totalorder %v1712_v4, 113  ;;  %v1778_v57 = vld [vmem:[#allocation5 + $0x60] sm:$0xff]  ;;  %v1781_v58 = vld [vmem:[#allocation5 + $0x68] sm:$0xff]  ;;  %s307_s12 = scalar_lea.vmem [#allocation10], %s1041_s8 }
  0x8b   : > { %vm380_vm6 = vcmp.lt.s32.totalorder %v1712_v4, 112  ;;  %v1787_v61 = vld [vmem:[#allocation5 + $0x70] sm:$0xff]  ;;  %v1789_v62 = vld [vmem:[#allocation5 + $0x78] sm:$0xff]  ;;  %vm387_vm7 = vcmp.lt.s32.totalorder %v1712_v4, 111 }
  0x8e   : > { %350 = vrot.lane.b32.xlu1 %v1680_v1, %s1423_s16  ;;  %348 = vrot.lane.b32.xlu0 %v1674_v0, %s1423_s16 }
  0x92   : > { %357 = vrot.lane.b32.xlu1 %v1680_v1, %s1424_s19  ;;  %355 = vrot.lane.b32.xlu0 %v1674_v0, %s1424_s19 }
  0x96   : > { %364 = vrot.lane.b32.xlu1 %v1680_v1, %s1425_s20  ;;  %362 = vrot.lane.b32.xlu0 %v1674_v0, %s1425_s20 }
  0x9a   : > { %371 = vrot.lane.b32.xlu1 %v1680_v1, %s1426_s10  ;;  %369 = vrot.lane.b32.xlu0 %v1674_v0, %s1426_s10 }
  0x9e   : > { %378 = vrot.lane.b32.xlu1 %v1680_v1, %s1428_s14  ;;  %376 = vrot.lane.b32.xlu0 %v1674_v0, %s1428_s14 }
  0xa2   : > { %385 = vrot.lane.b32.xlu1 %v1680_v1, %s1429_s11  ;;  %383 = vrot.lane.b32.xlu0 %v1674_v0, %s1429_s11 }
  0xf8   : > { %v342_v5 = vpop.permute.xlu1 %341  ;;  %v333_v6 = vpop.permute.xlu0 %332 }
  0xfc   : > { %v344_v11 = vpop.permute.xlu1 %343  ;;  %v335_v12 = vpop.permute.xlu0 %334 }
  0xfd   : > { %v346_v13 = vsel %vm345_vm0, %v342_v5, %v344_v11  ;;  %v347_v14 = vsel %vm345_vm0, %v344_v11, %v342_v5  ;;  %v339_v15 = vsel %vm338_vm1, %v333_v6, %v335_v12  ;;  %v340_v16 = vsel %vm338_vm1, %v335_v12, %v333_v6 }
  0xfe   : > { %v392_v17 = vmul.f32 %v347_v14, %v1715_v7  ;;  %v390_v18 = vmul.f32 %v340_v16, %v1718_v8  ;;  %v391_v19 = vmul.f32 %v339_v15, %v1720_v9  ;;  %v393_v20 = vmul.f32 %v346_v13, %v1722_v10  ;;  %v1800_v13 = vld [vmem:[#allocation5 + $0x80] sm:$0xff]  ;;  %v1802_v14 = vld [vmem:[#allocation5 + $0x88] sm:$0xff] }
 0x100   : > { %v351_v21 = vpop.permute.xlu1 %350  ;;  %v349_v22 = vpop.permute.xlu0 %348  ;;  %v1057_v23 = vpack.c.bf16 %v393_v20, %v391_v19  ;;  %v1059_v24 = vpack.c.bf16 %v392_v17, %v390_v18 }
 0x101   : > { %v353_v27 = vsel %vm352_vm2, %v349_v22, %v351_v21  ;;  %v354_v28 = vsel %vm352_vm2, %v351_v21, %v349_v22  ;;  %v1808_v21 = vld [vmem:[#allocation5 + $0x98] sm:$0xff]  ;;  %v1810_v22 = vld [vmem:[#allocation5 + $0x90] sm:$0xff] }
 0x102   : > { %1058 = vmatprep.subr.bf16.mxu0 %v1057_v23  ;;  %v394_v37 = vmul.f32 %v354_v28, %v1737_v25  ;;  %v395_v38 = vmul.f32 %v353_v27, %v1740_v26 }
 0x103   : > { %1060 = vmatpush1.bf16.msra.mxu0 %v1059_v24 }
 0x104   : > { %v358_v31 = vpop.permute.xlu1 %357  ;;  %v356_v32 = vpop.permute.xlu0 %355 }
 0x105   : > { %v360_v33 = vsel %vm359_vm3, %v356_v32, %v358_v31  ;;  %v361_v34 = vsel %vm359_vm3, %v358_v31, %v356_v32  ;;  %v408_v31 = vld [vmem:[#allocation7] sm:$0xff] }
 0x106   : > { %v396_v39 = vmul.f32 %v361_v34, %v1746_v29  ;;  %v397_v40 = vmul.f32 %v360_v33, %v1748_v30 }
 0x108   : > { %v365_v43 = vpop.permute.xlu1 %364  ;;  %v363_v44 = vpop.permute.xlu0 %362  ;;  %v1061_v45 = vpack.c.bf16 %v397_v40, %v395_v38  ;;  %v1063_v46 = vpack.c.bf16 %v396_v39, %v394_v37 }
 0x109   : > { %v367_v49 = vsel %vm366_vm4, %v363_v44, %v365_v43  ;;  %v368_v50 = vsel %vm366_vm4, %v365_v43, %v363_v44 }
 0x10a   : > { %v400_v51 = vmul.f32 %v367_v49, %v1763_v41  ;;  %v401_v52 = vmul.f32 %v368_v50, %v1765_v42  ;;  %1062 = vmatprep.subr.bf16.mxu0 %v1061_v45 }
 0x10b   : > { %1064 = vmatpush1.bf16.msra.mxu0 %v1063_v46 }
 0x10c   : > { %v372_v53 = vpop.permute.xlu1 %371  ;;  %v370_v54 = vpop.permute.xlu0 %369  ;;  %v1065_v55 = vpack.c.bf16 %v401_v52, %v399_v47  ;;  %v1067_v56 = vpack.c.bf16 %v400_v51, %v398_v48 }
 0x10d   : > { %v374_v59 = vsel %vm373_vm5, %v370_v54, %v372_v53  ;;  %v375_v60 = vsel %vm373_vm5, %v372_v53, %v370_v54 }
 0x10e   : > { %1066 = vmatprep.subr.bf16.mxu0 %v1065_v55  ;;  %v402_v5 = vmul.f32 %v374_v59, %v1778_v57  ;;  %v403_v6 = vmul.f32 %v375_v60, %v1781_v58 }
 0x10f   : > { %1068 = vmatpush1.bf16.msra.mxu0 %v1067_v56 }
 0x110   : > { %v379_v63 = vpop.permute.xlu1 %378  ;;  %v377_v0 = vpop.permute.xlu0 %376 }
 0x111   : > { %v381_v1 = vsel %vm380_vm6, %v377_v0, %v379_v63  ;;  %v382_v3 = vsel %vm380_vm6, %v379_v63, %v377_v0 }
 0x112   : > { %v404_v11 = vmul.f32 %v381_v1, %v1787_v61  ;;  %v405_v12 = vmul.f32 %v382_v3, %v1789_v62 }
 0x114   : > { %v386_v15 = vpop.permute.xlu1 %385  ;;  %v384_v16 = vpop.permute.xlu0 %383  ;;  %v1069_v17 = vpack.c.bf16 %v405_v12, %v403_v6  ;;  %v1071_v18 = vpack.c.bf16 %v404_v11, %v402_v5 }
 0x115   : > { %v388_v19 = vsel %vm387_vm7, %v384_v16, %v386_v15  ;;  %v389_v20 = vsel %vm387_vm7, %v386_v15, %v384_v16 }
 0x116   : > { %v406_v23 = vmul.f32 %v388_v19, %v1800_v13  ;;  %v407_v24 = vmul.f32 %v389_v20, %v1802_v14  ;;  %1070 = vmatprep.subr.bf16.mxu0 %v1069_v17 }
 0x117   : > { %1072 = vmatpush1.bf16.msra.mxu0 %v1071_v18 }
 0x118   : > { %v1073_v27 = vpack.c.bf16 %v1808_v21, %v407_v24  ;;  %v1075_v28 = vpack.c.bf16 %v1810_v22, %v406_v23 }
 0x11a   : > { %1074 = vmatprep.subr.bf16.mxu0 %v1073_v27 }
 0x11b   : > { %1076 = vmatpush1.bf16.msra.mxu0 %v1075_v28 }
 0x11e   : > { %1046 = vmatmul.mubr.msk.f32.vlgmr.msra.gmra.mrb[0].mxu0 %vm409_vm8, %v408_v31 }
 0x11f   : > { %763 = vmatprep.mubr.f32.mxu0 %v1427_v2 }
 0x1f1   : > { %v479_v32 = vpop.f32.mrb[0].mxu0 }
 0x1f2   : > { %v1818_v33 = vmax.f32 %v479_v32, 0.0  ;;  %v481_v34 = vpop.f32.mrb[1].mxu0 }
 0x1f3   : > { %v1820_v37 = vmax.f32 %v481_v34, 0.0 }
 0x1f4   : > { %486 = vrot.lane.b32.xlu0 %v1818_v33, %s1422_s27  ;;  %v542_v27 = vmul.f32 %v1818_v33, %v1757_v36 }
 0x1f5   : > { %488 = vrot.lane.b32.xlu1 %v1820_v37, %s1422_s27  ;;  %v543_v24 = vmul.f32 %v1820_v37, %v1755_v35 }
 0x1f8   : > { %492 = vrot.lane.b32.xlu0 %v1818_v33, %s1421_s29 }
 0x1f9   : > { %494 = vrot.lane.b32.xlu1 %v1820_v37, %s1421_s29 }
 0x1fc   : > { %498 = vrot.lane.b32.xlu0 %v1818_v33, %s1423_s16 }
 0x1fd   : > { %500 = vrot.lane.b32.xlu1 %v1820_v37, %s1423_s16 }
 0x200   : > { %504 = vrot.lane.b32.xlu0 %v1818_v33, %s1424_s19 }
 0x201   : > { %506 = vrot.lane.b32.xlu1 %v1820_v37, %s1424_s19 }
 0x204   : > { %510 = vrot.lane.b32.xlu0 %v1818_v33, %s1425_s20 }
 0x205   : > { %512 = vrot.lane.b32.xlu1 %v1820_v37, %s1425_s20 }
 0x208   : > { %516 = vrot.lane.b32.xlu0 %v1818_v33, %s1426_s10 }
 0x209   : > { %518 = vrot.lane.b32.xlu1 %v1820_v37, %s1426_s10 }
 0x20c   : > { %522 = vrot.lane.b32.xlu0 %v1818_v33, %s1428_s14 }
 0x20d   : > { %524 = vrot.lane.b32.xlu1 %v1820_v37, %s1428_s14 }
 0x210   : > { %528 = vrot.lane.b32.xlu0 %v1818_v33, %s1429_s11 }
 0x211   : > { %530 = vrot.lane.b32.xlu1 %v1820_v37, %s1429_s11 }
 0x266   : > { %v487_v38 = vpop.permute.xlu0 %486 }
 0x267   : > { %v489_v39 = vpop.permute.xlu1 %488 }
 0x268   : > { %v490_v40 = vsel %vm338_vm1, %v487_v38, %v489_v39  ;;  %v491_v43 = vsel %vm338_vm1, %v489_v39, %v487_v38 }
 0x269   : > { %v534_v48 = vmul.f32 %v491_v43, %v1718_v8  ;;  %v535_v50 = vmul.f32 %v490_v40, %v1720_v9 }
 0x26a   : > { %v493_v44 = vpop.permute.xlu0 %492 }
 0x26b   : > { %v495_v45 = vpop.permute.xlu1 %494 }
 0x26c   : > { %v496_v46 = vsel %vm345_vm0, %v493_v44, %v495_v45  ;;  %v497_v47 = vsel %vm345_vm0, %v495_v45, %v493_v44 }
 0x26d   : > { %v536_v49 = vmul.f32 %v497_v47, %v1715_v7  ;;  %v537_v51 = vmul.f32 %v496_v46, %v1722_v10 }
 0x26e   : > { %v499_v52 = vpop.permute.xlu0 %498 }
 0x26f   : > { %v501_v53 = vpop.permute.xlu1 %500  ;;  %v1077_v54 = vpack.c.bf16 %v537_v51, %v535_v50  ;;  %v1079_v55 = vpack.c.bf16 %v536_v49, %v534_v48 }
 0x270   : > { %v502_v56 = vsel %vm352_vm2, %v499_v52, %v501_v53  ;;  %v503_v59 = vsel %vm352_vm2, %v501_v53, %v499_v52 }
 0x271   : > { %1078 = vmatprep.subr.bf16.mxu1 %v1077_v54  ;;  %v538_v3 = vmul.f32 %v503_v59, %v1737_v25  ;;  %v539_v5 = vmul.f32 %v502_v56, %v1740_v26 }
 0x272   : > { %v505_v60 = vpop.permute.xlu0 %504  ;;  %1080 = vmatpush1.bf16.msra.mxu1 %v1079_v55 }
 0x273   : > { %v507_v63 = vpop.permute.xlu1 %506 }
 0x274   : > { %v508_v0 = vsel %vm359_vm3, %v505_v60, %v507_v63  ;;  %v509_v1 = vsel %vm359_vm3, %v507_v63, %v505_v60 }
 0x275   : > { %v540_v6 = vmul.f32 %v509_v1, %v1746_v29  ;;  %v541_v11 = vmul.f32 %v508_v0, %v1748_v30  ;;  %v552_v0 = vld [vmem:[%s2109_s3] sm:$0xff] }
 0x276   : > { %v511_v12 = vpop.permute.xlu0 %510 }
 0x277   : > { %v513_v15 = vpop.permute.xlu1 %512  ;;  %v1081_v16 = vpack.c.bf16 %v541_v11, %v539_v5  ;;  %v1083_v17 = vpack.c.bf16 %v540_v6, %v538_v3 }
 0x278   : > { %v514_v18 = vsel %vm366_vm4, %v511_v12, %v513_v15  ;;  %v515_v19 = vsel %vm366_vm4, %v513_v15, %v511_v12 }
 0x279   : > { %v544_v20 = vmul.f32 %v514_v18, %v1763_v41  ;;  %v545_v23 = vmul.f32 %v515_v19, %v1765_v42  ;;  %1082 = vmatprep.subr.bf16.mxu1 %v1081_v16 }
 0x27a   : > { %v517_v28 = vpop.permute.xlu0 %516  ;;  %1084 = vmatpush1.bf16.msra.mxu1 %v1083_v17 }
 0x27b   : > { %v519_v31 = vpop.permute.xlu1 %518  ;;  %v1085_v32 = vpack.c.bf16 %v545_v23, %v543_v24  ;;  %v1087_v34 = vpack.c.bf16 %v544_v20, %v542_v27 }
 0x27c   : > { %v520_v38 = vsel %vm373_vm5, %v517_v28, %v519_v31  ;;  %v521_v39 = vsel %vm373_vm5, %v519_v31, %v517_v28 }
 0x27d   : > { %1086 = vmatprep.subr.bf16.mxu1 %v1085_v32  ;;  %v546_v46 = vmul.f32 %v520_v38, %v1778_v57  ;;  %v547_v47 = vmul.f32 %v521_v39, %v1781_v58 }
 0x27e   : > { %v523_v40 = vpop.permute.xlu0 %522  ;;  %1088 = vmatpush1.bf16.msra.mxu1 %v1087_v34 }
 0x27f   : > { %v525_v43 = vpop.permute.xlu1 %524 }
 0x280   : > { %v526_v44 = vsel %vm380_vm6, %v523_v40, %v525_v43  ;;  %v527_v45 = vsel %vm380_vm6, %v525_v43, %v523_v40 }
 0x281   : > { %v548_v48 = vmul.f32 %v526_v44, %v1787_v61  ;;  %v549_v49 = vmul.f32 %v527_v45, %v1789_v62 }
 0x282   : > { %v529_v50 = vpop.permute.xlu0 %528 }
 0x283   : > { %v531_v51 = vpop.permute.xlu1 %530  ;;  %v1089_v52 = vpack.c.bf16 %v549_v49, %v547_v47  ;;  %v1091_v53 = vpack.c.bf16 %v548_v48, %v546_v46 }
 0x284   : > { %v532_v54 = vsel %vm387_vm7, %v529_v50, %v531_v51  ;;  %v533_v55 = vsel %vm387_vm7, %v531_v51, %v529_v50 }
 0x285   : > { %v550_v56 = vmul.f32 %v532_v54, %v1800_v13  ;;  %v551_v59 = vmul.f32 %v533_v55, %v1802_v14  ;;  %1090 = vmatprep.subr.bf16.mxu1 %v1089_v52 }
 0x286   : > { %1092 = vmatpush1.bf16.msra.mxu1 %v1091_v53 }
 0x287   : > { %v1093_v60 = vpack.c.bf16 %v1808_v21, %v551_v59  ;;  %v1095_v63 = vpack.c.bf16 %v1810_v22, %v550_v56 }
 0x289   : > { %1094 = vmatprep.subr.bf16.mxu1 %v1093_v60 }
 0x28a   : > { %1096 = vmatpush1.bf16.msra.mxu1 %v1095_v63 }
 0x28d   : > { %1047 = vmatmul.mubr.msk.f32.vlgmr.msra.gmra.mrb[0].mxu1 %vm409_vm8, %v552_v0 }
 0x28e   : > { %908 = vmatprep.mubr.f32.mxu1 %v1427_v2 }
 0x360   : > { %v622_v1 = vpop.f32.mrb[0].mxu1 }
 0x361   : > { %v627_v3 = vmax.f32 %v622_v1, 0.0  ;;  %v624_v5 = vpop.f32.mrb[1].mxu1 }
 0x362   : > { %v628_v6 = vmax.f32 %v624_v5, 0.0 }
 0x363   : > { %629 = vrot.lane.b32.xlu0 %v627_v3, %s1422_s27  ;;  %v685_v56 = vmul.f32 %v627_v3, %v1757_v36 }
 0x364   : > { %631 = vrot.lane.b32.xlu1 %v628_v6, %s1422_s27  ;;  %v686_v63 = vmul.f32 %v628_v6, %v1755_v35 }
 0x367   : > { %635 = vrot.lane.b32.xlu0 %v627_v3, %s1421_s29 }
 0x368   : > { %637 = vrot.lane.b32.xlu1 %v628_v6, %s1421_s29 }
 0x36b   : > { %641 = vrot.lane.b32.xlu0 %v627_v3, %s1423_s16 }
 0x36c   : > { %643 = vrot.lane.b32.xlu1 %v628_v6, %s1423_s16 }
 0x36f   : > { %647 = vrot.lane.b32.xlu0 %v627_v3, %s1424_s19 }
 0x370   : > { %649 = vrot.lane.b32.xlu1 %v628_v6, %s1424_s19 }
 0x373   : > { %653 = vrot.lane.b32.xlu0 %v627_v3, %s1425_s20 }
 0x374   : > { %655 = vrot.lane.b32.xlu1 %v628_v6, %s1425_s20 }
 0x377   : > { %659 = vrot.lane.b32.xlu0 %v627_v3, %s1426_s10 }
 0x378   : > { %661 = vrot.lane.b32.xlu1 %v628_v6, %s1426_s10 }
 0x37b   : > { %665 = vrot.lane.b32.xlu0 %v627_v3, %s1428_s14 }
 0x37c   : > { %667 = vrot.lane.b32.xlu1 %v628_v6, %s1428_s14 }
 0x37f   : > { %671 = vrot.lane.b32.xlu0 %v627_v3, %s1429_s11 }
 0x380   : > { %673 = vrot.lane.b32.xlu1 %v628_v6, %s1429_s11 }
 0x3d5   : > { %v630_v2 = vpop.permute.xlu0 %629 }
 0x3d6   : > { %v632_v11 = vpop.permute.xlu1 %631 }
 0x3d7   : > { %v633_v12 = vsel %vm338_vm1, %v630_v2, %v632_v11  ;;  %v634_v15 = vsel %vm338_vm1, %v632_v11, %v630_v2 }
 0x3d8   : > { %v677_v20 = vmul.f32 %v634_v15, %v1718_v8  ;;  %v678_v23 = vmul.f32 %v633_v12, %v1720_v9 }
 0x3d9   : > { %v636_v16 = vpop.permute.xlu0 %635 }
 0x3da   : > { %v638_v17 = vpop.permute.xlu1 %637 }
 0x3db   : > { %v639_v18 = vsel %vm345_vm0, %v636_v16, %v638_v17  ;;  %v640_v19 = vsel %vm345_vm0, %v638_v17, %v636_v16 }
 0x3dc   : > { %v679_v24 = vmul.f32 %v640_v19, %v1715_v7  ;;  %v680_v27 = vmul.f32 %v639_v18, %v1722_v10 }
 0x3dd   : > { %v642_v28 = vpop.permute.xlu0 %641 }
 0x3de   : > { %v1099_v31 = vpack.c.bf16 %v679_v24, %v677_v20  ;;  %v644_v32 = vpop.permute.xlu1 %643  ;;  %v1097_v34 = vpack.c.bf16 %v680_v27, %v678_v23 }
 0x3df   : > { %v645_v38 = vsel %vm352_vm2, %v642_v28, %v644_v32  ;;  %v646_v39 = vsel %vm352_vm2, %v644_v32, %v642_v28 }
 0x3e0   : > { %1098 = vmatprep.subr.bf16.mxu0 %v1097_v34  ;;  %v681_v46 = vmul.f32 %v646_v39, %v1737_v25  ;;  %v682_v47 = vmul.f32 %v645_v38, %v1740_v26 }
 0x3e1   : > { %v648_v40 = vpop.permute.xlu0 %647  ;;  %1100 = vmatpush1.bf16.msra.mxu0 %v1099_v31 }
 0x3e2   : > { %v650_v43 = vpop.permute.xlu1 %649 }
 0x3e3   : > { %v651_v44 = vsel %vm359_vm3, %v648_v40, %v650_v43  ;;  %v652_v45 = vsel %vm359_vm3, %v650_v43, %v648_v40  ;;  %v695_v43 = vld [vmem:[#allocation8] sm:$0xff] }
 0x3e4   : > { %v683_v48 = vmul.f32 %v652_v45, %v1746_v29  ;;  %v684_v49 = vmul.f32 %v651_v44, %v1748_v30 }
 0x3e5   : > { %v654_v50 = vpop.permute.xlu0 %653 }
 0x3e6   : > { %v1103_v51 = vpack.c.bf16 %v683_v48, %v681_v46  ;;  %v656_v52 = vpop.permute.xlu1 %655  ;;  %v1101_v53 = vpack.c.bf16 %v684_v49, %v682_v47 }
 0x3e7   : > { %v657_v54 = vsel %vm366_vm4, %v654_v50, %v656_v52  ;;  %v658_v55 = vsel %vm366_vm4, %v656_v52, %v654_v50 }
 0x3e8   : > { %v687_v59 = vmul.f32 %v657_v54, %v1763_v41  ;;  %v688_v60 = vmul.f32 %v658_v55, %v1765_v42  ;;  %1102 = vmatprep.subr.bf16.mxu0 %v1101_v53 }
 0x3e9   : > { %v660_v0 = vpop.permute.xlu0 %659  ;;  %1104 = vmatpush1.bf16.msra.mxu0 %v1103_v51 }
 0x3ea   : > { %v1107_v1 = vpack.c.bf16 %v687_v59, %v685_v56  ;;  %v662_v5 = vpop.permute.xlu1 %661  ;;  %v1105_v2 = vpack.c.bf16 %v688_v60, %v686_v63 }
 0x3eb   : > { %v663_v11 = vsel %vm373_vm5, %v660_v0, %v662_v5  ;;  %v664_v12 = vsel %vm373_vm5, %v662_v5, %v660_v0 }
 0x3ec   : > { %1106 = vmatprep.subr.bf16.mxu0 %v1105_v2  ;;  %v689_v17 = vmul.f32 %v663_v11, %v1778_v57  ;;  %v690_v18 = vmul.f32 %v664_v12, %v1781_v58 }
 0x3ed   : > { %v666_v3 = vpop.permute.xlu0 %665  ;;  %1108 = vmatpush1.bf16.msra.mxu0 %v1107_v1 }
 0x3ee   : > { %v668_v15 = vpop.permute.xlu1 %667 }
 0x3ef   : > { %v669_v16 = vsel %vm380_vm6, %v666_v3, %v668_v15  ;;  %v670_v6 = vsel %vm380_vm6, %v668_v15, %v666_v3 }
 0x3f0   : > { %v691_v19 = vmul.f32 %v669_v16, %v1787_v61  ;;  %v692_v20 = vmul.f32 %v670_v6, %v1789_v62 }
 0x3f1   : > { %v672_v23 = vpop.permute.xlu0 %671 }
 0x3f2   : > { %v1111_v24 = vpack.c.bf16 %v691_v19, %v689_v17  ;;  %v674_v27 = vpop.permute.xlu1 %673  ;;  %v1109_v28 = vpack.c.bf16 %v692_v20, %v690_v18 }
 0x3f3   : > { %v675_v31 = vsel %vm387_vm7, %v672_v23, %v674_v27  ;;  %v676_v32 = vsel %vm387_vm7, %v674_v27, %v672_v23 }
 0x3f4   : > { %v693_v34 = vmul.f32 %v675_v31, %v1800_v13  ;;  %v694_v38 = vmul.f32 %v676_v32, %v1802_v14  ;;  %1110 = vmatprep.subr.bf16.mxu0 %v1109_v28 }
 0x3f5   : > { %1112 = vmatpush1.bf16.msra.mxu0 %v1111_v24 }
 0x3f6   : > { %v1115_v39 = vpack.c.bf16 %v1810_v22, %v693_v34  ;;  %v1113_v40 = vpack.c.bf16 %v1808_v21, %v694_v38 }
 0x3f8   : > { %1114 = vmatprep.subr.bf16.mxu0 %v1113_v40 }
 0x3f9   : > { %1116 = vmatpush1.bf16.msra.mxu0 %v1115_v39 }
 0x3fc   : > { %1048 = vmatmul.mubr.msk.f32.vlgmr.msra.gmra.mrb[2].mxu0 %vm409_vm8, %v695_v43 }
 0x4cf   : > { %v765_v44 = vpop.f32.mrb[2].mxu0 }
 0x4d0   : > { %v770_v45 = vmax.f32 %v765_v44, 0.0  ;;  %v767_v46 = vpop.f32.mrb[3].mxu0 }
 0x4d1   : > { %v771_v47 = vmax.f32 %v767_v46, 0.0 }
 0x4d2   : > { %v772_v48 = vadd.f32 %v770_v45, %v1818_v33 }
 0x4d3   : > { %v773_v49 = vadd.f32 %v771_v47, %v1820_v37 }
 0x4d4   : > { %774 = vrot.lane.b32.xlu0 %v772_v48, %s1422_s27  ;;  %v830_v27 = vmul.f32 %v772_v48, %v1757_v36 }
 0x4d5   : > { %776 = vrot.lane.b32.xlu1 %v773_v49, %s1422_s27  ;;  %s1056_s27 = sshll.u32 %s1487_s25, 8  ;;  %s1430_s25 = smov [#allocation10]  }
 0x4d6   : > { %s1343_s8 = sshll.u32 %s1430_s25, 4  ;;  %s1344_s8 = int_to_ptr.vmem [resolvable:$false] %s1343_s8 }
 0x4d8   : > { %780 = vrot.lane.b32.xlu0 %v772_v48, %s1421_s29 }
 0x4d9   : > { %782 = vrot.lane.b32.xlu1 %v773_v49, %s1421_s29  ;;  %s932_s29 = sshll.u32 %s307_s12, 4  ;;  %s2059_s29 = int_to_ptr.vmem [resolvable:$true] %s932_s29 }
 0x4da   : > { %p1346_p12 = scmp.lt.s32.totalorder %s2059_s29, %s1344_s8 }
 0x4dc   : > { %786 = vrot.lane.b32.xlu0 %v772_v48, %s1423_s16 }
 0x4dd   : > { %788 = vrot.lane.b32.xlu1 %v773_v49, %s1423_s16 }
 0x4e0   : > { %792 = vrot.lane.b32.xlu0 %v772_v48, %s1424_s19 }
 0x4e1   : > { %794 = vrot.lane.b32.xlu1 %v773_v49, %s1424_s19 }
 0x4e4   : > { %798 = vrot.lane.b32.xlu0 %v772_v48, %s1425_s20 }
 0x4e5   : > { %800 = vrot.lane.b32.xlu1 %v773_v49, %s1425_s20  ;;  %s2064_s20 = scalar_lea.hbm %s2112_s6, %s1056_s27 }
 0x4e8   : > { %804 = vrot.lane.b32.xlu0 %v772_v48, %s1426_s10 }
 0x4e9   : > { %806 = vrot.lane.b32.xlu1 %v773_v49, %s1426_s10  ;;  %s918_s10 = scalar_lea.sflag [#allocation4], %s1656_s26 }
 0x4ec   : > { %810 = vrot.lane.b32.xlu0 %v772_v48, %s1428_s14 }
 0x4ed   : > { %812 = vrot.lane.b32.xlu1 %v773_v49, %s1428_s14  ;;  %s1339_s14 = scalar_lea.vmem %s2059_s29, 256 }
 0x4ee   : > { %p1340_p10 = scmp.ne.s32.totalorder %s2059_s29, %s1339_s14 }
 0x4f0   : > { %816 = vrot.lane.b32.xlu0 %v772_v48, %s1429_s11  ;;  %p1341_p3 = pnand %p1340_p10, %p1611_p5 }
 0x4f1   : > { %818 = vrot.lane.b32.xlu1 %v773_v49, %s1429_s11  ;;  %s1345_s11 = scalar_lea.vmem %s1344_s8, 512 }
 0x4f2   : > { %p1342_p7 = pneg %p1341_p3  ;;  %p1347_p2 = scmp.lt.s32.totalorder %s1345_s11, %s1339_s14 }
 0x4f4   : > { %p1348_p1 = por %p1347_p2, %p1346_p12 }
 0x4f6   : > { %p1349_p4 = pnand %p1348_p1, %p1342_p7 }
 0x546   : > { %v775_v33 = vpop.permute.xlu0 %774 }
 0x547   : > { %v777_v37 = vpop.permute.xlu1 %776 }
 0x548   : > { %v778_v50 = vsel %vm338_vm1, %v775_v33, %v777_v37  ;;  %v779_v51 = vsel %vm338_vm1, %v777_v37, %v775_v33  ;;  %v840_v37 = vld [vmem:[%s2111_s5] sm:$0xff] }
 0x549   : > { %v822_v56 = vmul.f32 %v779_v51, %v1718_v8  ;;  %v823_v59 = vmul.f32 %v778_v50, %v1720_v9 }
 0x54a   : > { %v781_v52 = vpop.permute.xlu0 %780 }
 0x54b   : > { %v783_v53 = vpop.permute.xlu1 %782 }
 0x54c   : > { %v784_v54 = vsel %vm345_vm0, %v781_v52, %v783_v53  ;;  %v785_v55 = vsel %vm345_vm0, %v783_v53, %v781_v52 }
 0x54d   : > { %v824_v60 = vmul.f32 %v785_v55, %v1715_v7  ;;  %v825_v63 = vmul.f32 %v784_v54, %v1722_v10 }
 0x54e   : > { %v787_v0 = vpop.permute.xlu0 %786 }
 0x54f   : > { %v1119_v1 = vpack.c.bf16 %v824_v60, %v822_v56  ;;  %v789_v5 = vpop.permute.xlu1 %788  ;;  %v1117_v2 = vpack.c.bf16 %v825_v63, %v823_v59 }
 0x550   : > { %v790_v11 = vsel %vm352_vm2, %v787_v0, %v789_v5  ;;  %v791_v12 = vsel %vm352_vm2, %v789_v5, %v787_v0 }
 0x551   : > { %1118 = vmatprep.subr.bf16.mxu1 %v1117_v2  ;;  %v826_v10 = vmul.f32 %v791_v12, %v1737_v25  ;;  %v827_v15 = vmul.f32 %v790_v11, %v1740_v26 }
 0x552   : > { %v793_v3 = vpop.permute.xlu0 %792  ;;  %1120 = vmatpush1.bf16.msra.mxu1 %v1119_v1 }
 0x553   : > { %v795_v8 = vpop.permute.xlu1 %794 }
 0x554   : > { %v796_v9 = vsel %vm359_vm3, %v793_v3, %v795_v8  ;;  %v797_v7 = vsel %vm359_vm3, %v795_v8, %v793_v3 }
 0x555   : > { %v828_v16 = vmul.f32 %v797_v7, %v1746_v29  ;;  %v829_v6 = vmul.f32 %v796_v9, %v1748_v30  ;;  %v831_v29 = vmul.f32 %v773_v49, %v1755_v35 }
 0x556   : > { %v799_v17 = vpop.permute.xlu0 %798 }
 0x557   : > { %v1123_v18 = vpack.c.bf16 %v828_v16, %v826_v10  ;;  %v801_v19 = vpop.permute.xlu1 %800  ;;  %v1121_v20 = vpack.c.bf16 %v829_v6, %v827_v15 }
 0x558   : > { %v802_v23 = vsel %vm366_vm4, %v799_v17, %v801_v19  ;;  %v803_v24 = vsel %vm366_vm4, %v801_v19, %v799_v17 }
 0x559   : > { %v832_v25 = vmul.f32 %v802_v23, %v1763_v41  ;;  %v833_v26 = vmul.f32 %v803_v24, %v1765_v42  ;;  %1122 = vmatprep.subr.bf16.mxu1 %v1121_v20 }
 0x55a   : > { %v805_v30 = vpop.permute.xlu0 %804  ;;  %1124 = vmatpush1.bf16.msra.mxu1 %v1123_v18 }
 0x55b   : > { %v1127_v28 = vpack.c.bf16 %v832_v25, %v830_v27  ;;  %v807_v31 = vpop.permute.xlu1 %806  ;;  %v1125_v32 = vpack.c.bf16 %v833_v26, %v831_v29 }
 0x55c   : > { %v808_v34 = vsel %vm373_vm5, %v805_v30, %v807_v31  ;;  %v809_v38 = vsel %vm373_vm5, %v807_v31, %v805_v30 }
 0x55d   : > { %1126 = vmatprep.subr.bf16.mxu1 %v1125_v32  ;;  %v834_v39 = vmul.f32 %v808_v34, %v1778_v57  ;;  %v835_v40 = vmul.f32 %v809_v38, %v1781_v58 }
 0x55e   : > { %v811_v36 = vpop.permute.xlu0 %810  ;;  %1128 = vmatpush1.bf16.msra.mxu1 %v1127_v28 }
 0x55f   : > { %v813_v41 = vpop.permute.xlu1 %812 }
 0x560   : > { %v814_v42 = vsel %vm380_vm6, %v811_v36, %v813_v41  ;;  %v815_v35 = vsel %vm380_vm6, %v813_v41, %v811_v36 }
 0x561   : > { %v836_v43 = vmul.f32 %v814_v42, %v1787_v61  ;;  %v837_v44 = vmul.f32 %v815_v35, %v1789_v62 }
 0x562   : > { %v817_v45 = vpop.permute.xlu0 %816 }
 0x563   : > { %v1131_v46 = vpack.c.bf16 %v836_v43, %v834_v39  ;;  %v819_v47 = vpop.permute.xlu1 %818  ;;  %v1129_v48 = vpack.c.bf16 %v837_v44, %v835_v40 }
 0x564   : > { %v820_v49 = vsel %vm387_vm7, %v817_v45, %v819_v47  ;;  %v821_v33 = vsel %vm387_vm7, %v819_v47, %v817_v45 }
 0x565   : > { %v838_v57 = vmul.f32 %v820_v49, %v1800_v13  ;;  %v839_v58 = vmul.f32 %v821_v33, %v1802_v14  ;;  %1130 = vmatprep.subr.bf16.mxu1 %v1129_v48 }
 0x566   : > { %1132 = vmatpush1.bf16.msra.mxu1 %v1131_v46 }
 0x567   : > { %v1135_v61 = vpack.c.bf16 %v1810_v22, %v838_v57  ;;  %v1133_v62 = vpack.c.bf16 %v1808_v21, %v839_v58 }
 0x569   : > { %1134 = vmatprep.subr.bf16.mxu1 %v1133_v62 }
 0x56a   : > { %1136 = vmatpush1.bf16.msra.mxu1 %v1135_v61 }
 0x56d   : > { %1049 = vmatmul.mubr.msk.f32.vlgmr.msra.gmra.mrb[2].mxu1 %vm409_vm8, %v840_v37 }
 0x640   : > { %v910_v4 = vpop.f32.mrb[2].mxu1 }
 0x641   : > { %915 = vst [vmem:[%s307_s12] sm:$0xff] %v910_v4  ;;  %v912_v13 = vpop.f32.mrb[3].mxu1 }
 0x642   : > { %916 = vst [vmem:[%s307_s12 + $0x8] sm:$0xff] %v912_v13 }
 0x643   : > { %1352 = shalt.err (!%p1349_p4)
}
 0x644   : > { %s1353_s26 = scalar_lea.hbm %s2064_s20, 256  ;;  %s1357_s7 = scalar_lea.hbm %s2112_s6, 512 }
 0x645   : > { %p1354_p0 = scmp.ne.s32.totalorder %s2064_s20, %s1353_s26  ;;  %p1358_p8 = scmp.lt.u32.totalorder %s2064_s20, %s2112_s6 }
 0x646   : > { %p1359_p13 = scmp.lt.u32.totalorder %s1357_s7, %s1353_s26  ;;  %p1361_p10 = scmp.lt.u32.totalorder %s1353_s26, %s2064_s20 }
 0x647   : > { %p1355_p9 = pnand %p1354_p0, %p1611_p5 }
 0x648   : > { %p1360_p6 = por %p1359_p13, %p1358_p8 }
 0x649   : > { %p1356_p11 = pneg %p1355_p9 }
 0x64a   : > { %p1362_p3 = por %p1361_p10, %p1360_p6 }
 0x64c   : > { %p1363_p7 = pnand %p1362_p3, %p1356_p11 }
 0x64e   : > { %1366 = shalt.err (!%p1363_p7)
}
 0x64f   : > { %1151 = dma.vmem_to_hbm [thread:$0]  (%p1611_p5), %s2059_s29, 256, %s2064_s20, %s918_s10  }
 0x650 PF: > { %s944_s27 = sand.u32 1, %s1401_s21   ;;  %p2130_p12 = scmp.ne.s32.totalorder %s2117_s28, 0 }
 0x651   : > { %p2131_p2 = scmp.ge.s32.totalorder %s1413_s24, 2  ;;  %s945_s16 = scalar_lea.sflag [#allocation4], %s944_s27 }
 0x653   : > { %p1168_p1 = pnand %p2131_p2, %p2130_p12 }
 0x655   : > { %1396 = dma.done.wait (!%p1168_p1), %s945_s16, 256  }
 0x656   : > { %1398 = vsyncadd (!%p1168_p1), %s945_s16, 4294967040  ;;  %p21_p4 = scmp.ge.s32.totalorder %s1597_s18, 4   ;;  %s2132_s21 = smov %s1405_s22 }
 0x657   : > { %s2133_s22 = smov %s1409_s23  ;;  %s2134_s23 = smov %s1607_s30 }
 0x658   : > { %s2135_s24 = smov %s1597_s18  ;;  %23 = sbr.rel (!%p21_p4) target bundleno = 7 (0x7), region = 101 }
 0x65f   :  { %950 = vsyncpa [#allocation3], 1 }
 0x660   :  { %952 = vsyncpa [#allocation3 + $0x1], 1 }
 0x661   :  { %953 = vsyncpa [#allocation6], 1 }
 0x662   :  { %954 = vsyncpa [#allocation9], 1 }
 0x663   :  { %955 = vsyncpa [#allocation4], 1 }
 0x664   :  { %957 = vsyncpa [#allocation4 + $0x1], 1 }

</bundles_post_ra>
